<compile_context>
chip_gen: v7x
topology: tpu7x:2x2x1
jax: 0.10.0
libtpu: 0.0.40
codegen_flags: <defaults>
</compile_context>

<pallas_src>
import functools

import jax
import jax.numpy as jnp
from jax.experimental import pallas as pl
from jax.experimental.pallas import tpu as pltpu


def _round_up(x, m):
    return (x + m - 1) // m * m


def _fused_gcn_kernel(feat_ref, a_ref, w_ref, b_ref, o_ref, h_ref, acc_ref,
                      *, n_layers, tk):
    """Fused L-layer GraphConv stack.

    feat_ref: [N_pad, F_pad]  bf16   input features (read once at l==0, k==0)
    a_ref:    [N_pad, tk]     bf16   column slab k of A_norm
    w_ref:    [F_pad, F_pad]  bf16   layer l weight, zero-padded
    b_ref:    [1, F_pad]      f32    layer l bias, zero-padded
    o_ref:    [N_pad, F_pad]  f32    final-layer output (written once)
    h_ref:    [N_pad, F_pad]  bf16   VMEM scratch — resident H between layers
    acc_ref:  [N_pad, F_pad]  f32    VMEM scratch — per-layer accumulator
    """
    l = pl.program_id(0)
    k = pl.program_id(1)
    nk = pl.num_programs(1)

    # Load the input features into the resident H scratch exactly once.
    @pl.when(jnp.logical_and(l == 0, k == 0))
    def _():
        h_ref[...] = feat_ref[...]

    # Zero the accumulator at the start of each layer's reduction over k.
    @pl.when(k == 0)
    def _():
        acc_ref[...] = jnp.zeros_like(acc_ref)

    # H@W for this slab of source nodes: [tk, F_pad].  Across all k steps of a
    # layer this computes H @ W exactly once (disjoint slabs).
    start = pl.multiple_of(k * tk, tk)
    h_slab = h_ref[pl.ds(start, tk), :]
    hw = jnp.dot(h_slab, w_ref[...], preferred_element_type=jnp.float32)

    # Aggregate: A[:, slab_k] @ HW_slab -> accumulate in f32.
    acc_ref[...] += jnp.dot(a_ref[...], hw.astype(jnp.bfloat16),
                            preferred_element_type=jnp.float32)

    last_k = k == nk - 1

    # Epilogue (once per layer): bias + ELU, keep H resident for the next layer.
    @pl.when(jnp.logical_and(last_k, l < n_layers - 1))
    def _():
        out = acc_ref[...] + b_ref[...]
        # ELU(alpha=1); clamp before exp so the unselected lane never sees inf.
        out = jnp.where(out > 0.0, out, jnp.exp(jnp.minimum(out, 0.0)) - 1.0)
        h_ref[...] = out.astype(h_ref.dtype)

    # Final layer: bias only (no activation), write the output block once.
    @pl.when(jnp.logical_and(last_k, l == n_layers - 1))
    def _():
        o_ref[...] = (acc_ref[...] + b_ref[...]).astype(o_ref.dtype)


def gcn_forward(a_norm, features, params):
    """GCN.forward: fused stack of GraphConv layers (eval-mode dropout = identity)."""
    n, in_feats = features.shape
    out_feats = params[-1][0].shape[1]
    n_layers = len(params)

    # One lane-dense padded feature width shared by every layer.
    feat_dims = [in_feats] + [w.shape[1] for w, _ in params]
    f_pad = _round_up(max(feat_dims), 128)

    # Node padding / contraction tiling of A_norm.
    if n <= 512:
        n_pad = _round_up(n, 8)
        tk = n_pad                      # single k step, full-extent block
    else:
        tk = 512                        # multiple of 128 -> valid lane tile
        n_pad = _round_up(n, tk)
    nk = n_pad // tk

    # Zero-pad + cast inputs (zeros in padded rows/cols keep the math exact).
    a_p = jnp.pad(a_norm.astype(jnp.bfloat16),
                  ((0, n_pad - n), (0, n_pad - n)))
    feat_p = jnp.pad(features.astype(jnp.bfloat16),
                     ((0, n_pad - n), (0, f_pad - in_feats)))

    w_stack = jnp.zeros((n_layers, f_pad, f_pad), jnp.bfloat16)
    b_stack = jnp.zeros((n_layers, 1, f_pad), jnp.float32)
    for l, (w, b) in enumerate(params):
        fi, fo = w.shape
        w_stack = w_stack.at[l, :fi, :fo].set(w.astype(jnp.bfloat16))
        b_stack = b_stack.at[l, :, :fo].set(b.astype(jnp.float32))

    kernel = functools.partial(_fused_gcn_kernel, n_layers=n_layers, tk=tk)

    # Advisory hint for the XLA scheduler around the custom call.
    flops = 2 * n_layers * (n_pad * f_pad * f_pad + n_pad * n_pad * f_pad)
    transcendentals = (n_layers - 1) * n_pad * f_pad
    bytes_accessed = (n_layers * n_pad * n_pad * 2            # A streamed per layer
                      + n_pad * f_pad * (2 + 4)               # features in, output out
                      + n_layers * (f_pad * f_pad * 2 + f_pad * 4))
    cost = pl.CostEstimate(flops=flops, transcendentals=transcendentals,
                           bytes_accessed=bytes_accessed)

    out_p = pl.pallas_call(
        kernel,
        out_shape=jax.ShapeDtypeStruct((n_pad, f_pad), jnp.float32),
        grid_spec=pltpu.PrefetchScalarGridSpec(
            num_scalar_prefetch=0,
            grid=(n_layers, nk),
            in_specs=[
                pl.BlockSpec((n_pad, f_pad), lambda l, k: (0, 0)),           # features
                pl.BlockSpec((n_pad, tk), lambda l, k: (0, k)),              # A col slab
                pl.BlockSpec((None, f_pad, f_pad), lambda l, k: (l, 0, 0)),  # W_l
                pl.BlockSpec((None, 1, f_pad), lambda l, k: (l, 0, 0)),      # b_l
            ],
            out_specs=pl.BlockSpec((n_pad, f_pad), lambda l, k: (0, 0)),
            scratch_shapes=[
                pltpu.VMEM((n_pad, f_pad), jnp.bfloat16),   # resident H
                pltpu.VMEM((n_pad, f_pad), jnp.float32),    # layer accumulator
            ],
        ),
        compiler_params=pltpu.CompilerParams(
            dimension_semantics=("arbitrary", "arbitrary"),
            vmem_limit_bytes=32 * 1024 * 1024,
        ),
        cost_estimate=cost,
    )(feat_p, a_p, w_stack, b_stack)

    return out_p[:n, :out_feats]


def gcn_reference(a_norm, features, params):
    """Pure-JAX f32 reference of the same forward pass (eval mode)."""
    h = features
    for i, (w, b) in enumerate(params):
        h = a_norm @ (h @ w) + b
        if i != len(params) - 1:
            h = jnp.where(h > 0.0, h, jnp.exp(jnp.minimum(h, 0.0)) - 1.0)
    return h


def build_normalized_adjacency(n):
    """Deterministic graph: ring + self-loops, symmetrically normalized (norm='both')."""
    idx = jnp.arange(n)
    a = jnp.zeros((n, n), jnp.float32)
    a = a.at[idx, idx].set(1.0)                      # self loops
    a = a.at[idx, (idx + 1) % n].set(1.0)            # ring edges
    a = a.at[(idx + 1) % n, idx].set(1.0)
    deg = a.sum(axis=1)
    d_inv_sqrt = 1.0 / jnp.sqrt(deg)
    return a * d_inv_sqrt[:, None] * d_inv_sqrt[None, :]


def init_params(key, in_feats, n_hidden, out_feats, n_layers):
    """Deterministic Glorot-uniform weights, zero bias, matching GraphConv shapes."""
    dims = [in_feats] + [n_hidden] * n_layers + [out_feats]
    params = []
    for i in range(len(dims) - 1):
        key, sub = jax.random.split(key)
        fan_in, fan_out = dims[i], dims[i + 1]
        limit = (6.0 / (fan_in + fan_out)) ** 0.5
        w = jax.random.uniform(sub, (fan_in, fan_out), jnp.float32, -limit, limit)
        b = jnp.zeros((1, fan_out), jnp.float32)
        params.append((w, b))
    return params


if __name__ == "__main__":
    # Small, module-consistent shapes.
    N_NODES = 32
    IN_FEATS = 16
    N_HIDDEN = 32
    OUT_FEATS = 8
    N_LAYERS = 2      # -> total GraphConv layers = N_LAYERS + 1 = 3
    DROPOUT = 0.5     # unused in eval-mode forward

    key = jax.random.PRNGKey(0)
    key, fkey = jax.random.split(key)
    features = jax.random.normal(fkey, (N_NODES, IN_FEATS), jnp.float32)

    a_norm = build_normalized_adjacency(N_NODES)
    params = init_params(key, IN_FEATS, N_HIDDEN, OUT_FEATS, N_LAYERS)

    out = gcn_forward(a_norm, features, params)
    out = jax.block_until_ready(out)

    assert out.shape == (N_NODES, OUT_FEATS)
    assert jnp.all(jnp.isfinite(out))

    # bf16-compute vs f32 reference: generous tolerance.
    ref = gcn_reference(a_norm, features, params)
    max_err = float(jnp.max(jnp.abs(out - ref)))
    assert max_err < 0.2, f"max abs error vs reference too large: {max_err}"

    print("KERNEL_OK")
</pallas_src>

<mosaic_0001>
module attributes {stable_mosaic.version = 11 : i64} {
  func.func @_fused_gcn_kernel(%arg0: i32, %arg1: i32, %arg2: memref<32x128xbf16, #tpu.memory_space<vmem>>, %arg3: memref<32x32xbf16, #tpu.memory_space<vmem>>, %arg4: memref<1x128x128xbf16, #tpu.memory_space<vmem>>, %arg5: memref<1x1x128xf32, #tpu.memory_space<vmem>>, %arg6: memref<32x128xf32, #tpu.memory_space<vmem>>, %arg7: memref<32x128xbf16, #tpu.memory_space<vmem>>, %arg8: memref<32x128xf32, #tpu.memory_space<vmem>>) attributes {dimension_semantics = [#tpu.dimension_semantics<arbitrary>, #tpu.dimension_semantics<arbitrary>], iteration_bounds = array<i64: 3, 1>, scalar_prefetch = 0 : i64, scratch_operands = 2 : i64, tpu.core_type = #tpu.core_type<tc>, window_params = [{pipeline_mode = #tpu.pipeline_mode<synchronous>, transform_indices = @transform_0, window_bounds = array<i64: 32, 128>}, {transform_indices = @transform_1, window_bounds = array<i64: 32, 32>}, {transform_indices = @transform_2, window_bounds = array<i64: 1, 128, 128>}, {transform_indices = @transform_3, window_bounds = array<i64: 1, 1, 128>}, {pipeline_mode = #tpu.pipeline_mode<synchronous>, transform_indices = @transform_4, window_bounds = array<i64: 32, 128>}]} {
    %c0_i32 = arith.constant 0 : i32
    %0 = arith.cmpi eq, %arg0, %c0_i32 : i32
    %c0_i32_0 = arith.constant 0 : i32
    %1 = arith.cmpi eq, %arg1, %c0_i32_0 : i32
    %2 = arith.andi %0, %1 : i1
    %3 = arith.extui %2 : i1 to i32
    %c0_i32_1 = arith.constant 0 : i32
    %4 = arith.cmpi ne, %3, %c0_i32_1 : i32
    scf.if %4 {
      %c0_18 = arith.constant 0 : index
      %c0_19 = arith.constant 0 : index
      %30 = vector.load %arg2[%c0_18, %c0_19] : memref<32x128xbf16, #tpu.memory_space<vmem>>, vector<32x128xbf16>
      %c0_20 = arith.constant 0 : index
      %c0_21 = arith.constant 0 : index
      %31 = vector.load %arg7[%c0_20, %c0_21] : memref<32x128xbf16, #tpu.memory_space<vmem>>, vector<32x128xbf16>
      tpu.vector_store %arg7[%c0_20, %c0_21], %30 {strides = array<i32>} : memref<32x128xbf16, #tpu.memory_space<vmem>>, vector<32x128xbf16>,
    } else {
    }
    %c0_i32_2 = arith.constant 0 : i32
    %5 = arith.cmpi eq, %arg1, %c0_i32_2 : i32
    %6 = arith.extui %5 : i1 to i32
    %c0_i32_3 = arith.constant 0 : i32
    %7 = arith.cmpi ne, %6, %c0_i32_3 : i32
    scf.if %7 {
      %cst_18 = arith.constant 0.000000e+00 : f32
      %30 = vector.broadcast %cst_18 : f32 to vector<32x128xf32>
      %c0_19 = arith.constant 0 : index
      %c0_20 = arith.constant 0 : index
      %31 = vector.load %arg8[%c0_19, %c0_20] : memref<32x128xf32, #tpu.memory_space<vmem>>, vector<32x128xf32>
      tpu.vector_store %arg8[%c0_19, %c0_20], %30 {strides = array<i32>} : memref<32x128xf32, #tpu.memory_space<vmem>>, vector<32x128xf32>,
    } else {
    }
    %c32_i32 = arith.constant 32 : i32
    %8 = arith.muli %arg1, %c32_i32 : i32
    %9 = tpu.assume_multiple %8, 32 : i32
    %10 = arith.index_cast %9 : i32 to index
    %c0 = arith.constant 0 : index
    %11 = vector.load %arg7[%10, %c0] : memref<32x128xbf16, #tpu.memory_space<vmem>>, vector<32x128xbf16>
    %c0_4 = arith.constant 0 : index
    %c0_5 = arith.constant 0 : index
    %c0_6 = arith.constant 0 : index
    %12 = vector.load %arg4[%c0_4, %c0_5, %c0_6] : memref<1x128x128xbf16, #tpu.memory_space<vmem>>, vector<1x128x128xbf16>
    %13 = vector.shape_cast %12 : vector<1x128x128xbf16> to vector<128x128xbf16>
    %cst = arith.constant dense<0.000000e+00> : vector<32x128xf32>
    %14 = tpu.matmul %11, %13, %cst {dimension_numbers = #tpu.dot_dimension_numbers<[1], [0], [0], [1], [0, 0, 1, 1], [], []>} : vector<32x128xbf16>, vector<128x128xbf16>, vector<32x128xf32> -> vector<32x128xf32>
    %c0_7 = arith.constant 0 : index
    %c0_8 = arith.constant 0 : index
    %15 = vector.load %arg8[%c0_7, %c0_8] : memref<32x128xf32, #tpu.memory_space<vmem>>, vector<32x128xf32>
    %c0_9 = arith.constant 0 : index
    %c0_10 = arith.constant 0 : index
    %16 = vector.load %arg3[%c0_9, %c0_10] : memref<32x32xbf16, #tpu.memory_space<vmem>>, vector<32x32xbf16>
    %17 = arith.truncf %14 : vector<32x128xf32> to vector<32x128xbf16>
    %cst_11 = arith.constant dense<0.000000e+00> : vector<32x128xf32>
    %18 = tpu.matmul %16, %17, %cst_11 {dimension_numbers = #tpu.dot_dimension_numbers<[1], [0], [0], [1], [0, 0, 1, 1], [], []>} : vector<32x32xbf16>, vector<32x128xbf16>, vector<32x128xf32> -> vector<32x128xf32>
    %19 = arith.addf %15, %18 : vector<32x128xf32>
    %c0_12 = arith.constant 0 : index
    %c0_13 = arith.constant 0 : index
    %20 = vector.load %arg8[%c0_12, %c0_13] : memref<32x128xf32, #tpu.memory_space<vmem>>, vector<32x128xf32>
    tpu.vector_store %arg8[%c0_12, %c0_13], %19 {strides = array<i32>} : memref<32x128xf32, #tpu.memory_space<vmem>>, vector<32x128xf32>,
    %c0_i32_14 = arith.constant 0 : i32
    %21 = arith.cmpi eq, %arg1, %c0_i32_14 : i32
    %c2_i32 = arith.constant 2 : i32
    %22 = arith.cmpi slt, %arg0, %c2_i32 : i32
    %23 = arith.andi %21, %22 : i1
    %24 = arith.extui %23 : i1 to i32
    %c0_i32_15 = arith.constant 0 : i32
    %25 = arith.cmpi ne, %24, %c0_i32_15 : i32
    scf.if %25 {
      %c0_18 = arith.constant 0 : index
      %c0_19 = arith.constant 0 : index
      %30 = vector.load %arg8[%c0_18, %c0_19] : memref<32x128xf32, #tpu.memory_space<vmem>>, vector<32x128xf32>
      %c0_20 = arith.constant 0 : index
      %c0_21 = arith.constant 0 : index
      %c0_22 = arith.constant 0 : index
      %31 = vector.load %arg5[%c0_20, %c0_21, %c0_22] : memref<1x1x128xf32, #tpu.memory_space<vmem>>, vector<1x1x128xf32>
      %32 = vector.shape_cast %31 : vector<1x1x128xf32> to vector<1x128xf32>
      %33 = vector.broadcast %32 : vector<1x128xf32> to vector<32x128xf32>
      %34 = arith.addf %30, %33 : vector<32x128xf32>
      %cst_23 = arith.constant 0.000000e+00 : f32
      %35 = vector.broadcast %cst_23 : f32 to vector<32x128xf32>
      %36 = arith.cmpf ogt, %34, %35 : vector<32x128xf32>
      %cst_24 = arith.constant 0.000000e+00 : f32
      %37 = vector.broadcast %cst_24 : f32 to vector<32x128xf32>
      %38 = arith.minimumf %34, %37 : vector<32x128xf32>
      %39 = math.exp %38 : vector<32x128xf32>
      %cst_25 = arith.constant 1.000000e+00 : f32
      %40 = vector.broadcast %cst_25 : f32 to vector<32x128xf32>
      %41 = arith.subf %39, %40 : vector<32x128xf32>
      %42 = arith.select %36, %34, %41 : vector<32x128xi1>, vector<32x128xf32>
      %43 = arith.truncf %42 : vector<32x128xf32> to vector<32x128xbf16>
      %c0_26 = arith.constant 0 : index
      %c0_27 = arith.constant 0 : index
      %44 = vector.load %arg7[%c0_26, %c0_27] : memref<32x128xbf16, #tpu.memory_space<vmem>>, vector<32x128xbf16>
      tpu.vector_store %arg7[%c0_26, %c0_27], %43 {strides = array<i32>} : memref<32x128xbf16, #tpu.memory_space<vmem>>, vector<32x128xbf16>,
    } else {
    }
    %c2_i32_16 = arith.constant 2 : i32
    %26 = arith.cmpi eq, %arg0, %c2_i32_16 : i32
    %27 = arith.andi %21, %26 : i1
    %28 = arith.extui %27 : i1 to i32
    %c0_i32_17 = arith.constant 0 : i32
    %29 = arith.cmpi ne, %28, %c0_i32_17 : i32
    scf.if %29 {
      %c0_18 = arith.constant 0 : index
      %c0_19 = arith.constant 0 : index
      %30 = vector.load %arg8[%c0_18, %c0_19] : memref<32x128xf32, #tpu.memory_space<vmem>>, vector<32x128xf32>
      %c0_20 = arith.constant 0 : index
      %c0_21 = arith.constant 0 : index
      %c0_22 = arith.constant 0 : index
      %31 = vector.load %arg5[%c0_20, %c0_21, %c0_22] : memref<1x1x128xf32, #tpu.memory_space<vmem>>, vector<1x1x128xf32>
      %32 = vector.shape_cast %31 : vector<1x1x128xf32> to vector<1x128xf32>
      %33 = vector.broadcast %32 : vector<1x128xf32> to vector<32x128xf32>
      %34 = arith.addf %30, %33 : vector<32x128xf32>
      %c0_23 = arith.constant 0 : index
      %c0_24 = arith.constant 0 : index
      %35 = vector.load %arg6[%c0_23, %c0_24] : memref<32x128xf32, #tpu.memory_space<vmem>>, vector<32x128xf32>
      tpu.vector_store %arg6[%c0_23, %c0_24], %34 {strides = array<i32>} : memref<32x128xf32, #tpu.memory_space<vmem>>, vector<32x128xf32>,
    } else {
    }
    return
  }
  func.func @transform_0(%arg0: i32, %arg1: i32) -> (i32, i32) {
    %c0_i32 = arith.constant 0 : i32
    %c0_i32_0 = arith.constant 0 : i32
    %c0_i32_1 = arith.constant 0 : i32
    return %c0_i32, %c0_i32_0 : i32, i32
  }
  func.func @transform_1(%arg0: i32, %arg1: i32) -> (i32, i32) {
    %c0_i32 = arith.constant 0 : i32
    %c0_i32_0 = arith.constant 0 : i32
    return %c0_i32, %arg1 : i32, i32
  }
  func.func @transform_2(%arg0: i32, %arg1: i32) -> (i32, i32, i32) {
    %c0_i32 = arith.constant 0 : i32
    %c0_i32_0 = arith.constant 0 : i32
    %c0_i32_1 = arith.constant 0 : i32
    return %arg0, %c0_i32, %c0_i32_0 : i32, i32, i32
  }
  func.func @transform_3(%arg0: i32, %arg1: i32) -> (i32, i32, i32) {
    %c0_i32 = arith.constant 0 : i32
    %c0_i32_0 = arith.constant 0 : i32
    %c0_i32_1 = arith.constant 0 : i32
    return %arg0, %c0_i32, %c0_i32_0 : i32, i32, i32
  }
  func.func @transform_4(%arg0: i32, %arg1: i32) -> (i32, i32) {
    %c0_i32 = arith.constant 0 : i32
    %c0_i32_0 = arith.constant 0 : i32
    %c0_i32_1 = arith.constant 0 : i32
    return %c0_i32, %c0_i32_0 : i32, i32
  }
}

</mosaic_0001>

<bundles_post_ra>
// kernel: tpu_custom_call.1
= control target key start
LH: loop header
LB: loop body
LE: loop exit
PB: predicated region body
PF: predicated region fallthrough
CT: control target
= control target key end

     0   :  { %9 = vsyncpa [#allocation5], 0  ;;  %s1315_s0 = inlined_call_operand.hbm [shape: bf16[32,128], index: 0, kind: input, shape index: {}]   ;;  %s1316_s1 = inlined_call_operand.hbm [shape: bf16[32,32], index: 1, kind: input, shape index: {}]   ;;  %s1317_s2 = inlined_call_operand.hbm [shape: bf16[3,128,128], index: 2, kind: input, shape index: {}]   ;;  %s1318_s3 = inlined_call_operand.vmem [shape: f32[3,1,128], index: 3, kind: input, shape index: {}]   ;;  %s1319_s4 = inlined_call_operand.hbm [shape: f32[32,128], index: 4, kind: output, shape index: {}]  }
   0x1   :  { %10 = vsyncpa [#allocation8], 0 }
   0x2   :  { %11 = vsyncpa [#allocation6], 0  ;;  %s1074_s15 = smov 0   ;;  %s1076_s16 = smov 0  }
   0x3   :  { %s1078_s17 = smov 0   ;;  %s1080_s18 = smov 0  }
   0x4   :  { %s1082_s19 = smov 0   ;;  %s1084_s20 = smov 0  }
   0x5 LB: > { %s1103_s21 = sadd.s32 4294967295, %s1039_s20   ;;  %p90_p0 = scmp.ne.s32.totalorder %s1027_s17, %s1023_s16  ;;  %s1039_s20 = sphi %s1084_s20, %s17_s20   ;;  %s1035_s19 = sphi %s1082_s19, %s1339_s19   ;;  %s1031_s18 = sphi %s1080_s18, %s1338_s18   ;;  %s1027_s17 = sphi %s1078_s17, %s1337_s17   ;;  %s1023_s16 = sphi %s1076_s16, %s1336_s16   ;;  %s1019_s15 = sphi %s1074_s15, %s1335_s15  }
   0x6   : > { %p91_p1 = scmp.eq.s32.totalorder %s1039_s20, 0  ;;  %p96_p2 = scmp.ne.s32.totalorder %s1023_s16, %s1019_s15 }
   0x7   : > { %p1320_p3 = scmp.eq.s32.totalorder %s1103_s21, 0  ;;  %p673_p4 = scmp.ge.s32.totalorder %s1039_s20, 1 }
   0x8   : > { %p92_p5 = por %p91_p1, %p90_p0  ;;  %p154_p6 = scmp.lt.s32.totalorder %s1039_s20, 4 }
   0x9   : > { %p1114_p7 = por %p1320_p3, %p96_p2  ;;  %s1041_s24 = smov [#allocation4]  }
   0xa   : > { %p1118_p8 = pnand %p673_p4, %p154_p6  ;;  %s166_s25 = sshll.u32 %s1041_s24, 4  ;;  %s167_s25 = int_to_ptr.vmem [resolvable:$true] %s166_s25 }
   0xb   : > { %s1324_s22 = scalar_select %p1114_p7, 1, 0 }
   0xc   : > { %s1325_s23 = scalar_select %p1118_p8, 1, 0 }
   0xd   : > { %p771_p9 = pneg %p1118_p8  ;;  %p784_p11 = scmp.lt.s32.totalorder %s1039_s20, 3 }
   0xe   : > { %s865_s30 = scalar_lea.hbm %s1315_s0, 256 }
   0xf   : > { %p1126_p10 = pnand %p771_p9, %p1320_p3  ;;  %p1131_p12 = pnand %p784_p11, %p92_p5 }
  0x10   : > { %p866_p13 = scmp.ne.s32.totalorder %s1315_s0, %s865_s30  ;;  %p872_p4 = scmp.lt.u32.totalorder %s865_s30, %s1315_s0 }
  0x11   : > { %s1327_s27 = scalar_select %p1131_p12, 1, 0 }
  0x12   : > { %p867_p0 = pneg %p1126_p10 }
  0x14   : > { %p868_p1 = pnand %p867_p0, %p866_p13 }
  0x16   : > { %p869_p2 = pneg %p868_p1 }
  0x18   : > { %p874_p5 = pnand %p872_p4, %p869_p2 }
  0x1a   : > { %877 = shalt.err (!%p874_p5)
}
  0x1b   : > { %s878_s9 = scalar_lea.vmem %s167_s25, 256  ;;  %p886_p3 = scmp.lt.s32.totalorder %s167_s25, %s167_s25 }
  0x1c   : > { %p879_p6 = scmp.ne.s32.totalorder %s167_s25, %s878_s9  ;;  %p887_p7 = scmp.lt.s32.totalorder %s878_s9, %s878_s9 }
  0x1e   : > { %p881_p9 = pnand %p879_p6, %p867_p0  ;;  %p888_p8 = por %p887_p7, %p886_p3 }
  0x20   : > { %p882_p11 = pneg %p881_p9 }
  0x22   : > { %p889_p12 = pnand %p888_p8, %p882_p11 }
  0x24   : > { %892 = shalt.err (!%p889_p12)
}
  0x25   : > { %s1042_s10 = smov 64   ;;  %s1043_s11 = smov 4  }
  0x26   : > { %774 = dma.hbm_to_vmem [thread:$0]  (!%p1126_p10), %s1315_s0, 256, %s167_s25, [#allocation5], %s1042_s10, %s1042_s10, %s1043_s11  }
  0x27   : > { %s1044_s14 = smov [#allocation7]   ;;  %s893_s29 = scalar_lea.hbm %s1316_s1, 256 }
  0x28   : > { %s181_s15 = sshll.u32 %s1044_s14, 4  ;;  %p894_p3 = scmp.ne.s32.totalorder %s1316_s1, %s893_s29  ;;  %s182_s15 = int_to_ptr.vmem [resolvable:$true] %s181_s15 }
  0x29   : > { %p900_p12 = scmp.lt.u32.totalorder %s893_s29, %s1316_s1 }
  0x2a   : > { %p896_p7 = pnand %p894_p3, %p867_p0 }
  0x2c   : > { %p897_p8 = pneg %p896_p7 }
  0x2e   : > { %p902_p13 = pnand %p900_p12, %p897_p8 }
  0x30   : > { %905 = shalt.err (!%p902_p13)
}
  0x31   : > { %s906_s25 = scalar_lea.vmem %s182_s15, 256  ;;  %p914_p5 = scmp.lt.s32.totalorder %s182_s15, %s182_s15 }
  0x32   : > { %p907_p1 = scmp.ne.s32.totalorder %s182_s15, %s906_s25  ;;  %p915_p6 = scmp.lt.s32.totalorder %s906_s25, %s906_s25 }
  0x34   : > { %p909_p2 = pnand %p907_p1, %p867_p0  ;;  %p916_p9 = por %p915_p6, %p914_p5 }
  0x36   : > { %p910_p4 = pneg %p909_p2 }
  0x38   : > { %p917_p11 = pnand %p916_p9, %p910_p4 }
  0x3a   : > { %920 = shalt.err (!%p917_p11)
}
  0x3b   : > { %777 = dma.hbm_to_vmem [thread:$0]  (!%p1126_p10), %s1316_s1, 256, %s182_s15, [#allocation8], %s1042_s10, %s1042_s10, %s1043_s11  }
  0x3c   : > { %s29_s12 = sadd.s32 1, %s1035_s19  ;;  %s83_s13 = sadd.s32 1, %s1027_s17 }
  0x3d   : > { %p31_p0 = scmp.ge.s32.totalorder %s29_s12, 3  ;;  %s195_s14 = sand.u32 1, %s1039_s20  }
  0x3e   : > { %s197_s26 = sand.u32 1, %s1027_s17   ;;  %s711_s28 = sshll.u32 %s1035_s19, 10 }
  0x3f   : > { %s1341_s12 = smov (%p31_p0, %s29_s12), 0  ;;  %s677_s24 = sshll.u32 %s197_s26, 6 }
  0x40   : > { %s80_s29 = ssub.s32 %s1035_s19, %s1341_s12  ;;  %s1195_s6 = scalar_lea.hbm %s1317_s2, %s711_s28 }
  0x41   : > { %p81_p3 = scmp.eq.s32.totalorder %s80_s29, 0  ;;  %s199_s15 = scalar_lea.vmem [#allocation9], %s677_s24 }
  0x42   : > { %s206_s7 = sshll.u32 %s199_s15, 4  ;;  %s1202_s8 = scalar_lea.sflag [#allocation5], %s195_s14  ;;  %s1200_s7 = int_to_ptr.vmem [resolvable:$true] %s206_s7 }
  0x43   : > { %s1198_s25 = scalar_select %p81_p3, %s1027_s17, %s83_s13  }
  0x44   : > { %s921_s9 = scalar_lea.hbm %s1195_s6, 1024  ;;  %p1328_p7 = scmp.ne.s32.totalorder %s1327_s27, 0 }
  0x45   : > { %p922_p10 = scmp.ne.s32.totalorder %s1195_s6, %s921_s9  ;;  %s926_s29 = scalar_lea.hbm %s1317_s2, 3072 }
  0x46   : > { %p923_p8 = pneg %p1328_p7  ;;  %p927_p1 = scmp.lt.u32.totalorder %s1195_s6, %s1317_s2 }
  0x47   : > { %p928_p2 = scmp.lt.u32.totalorder %s926_s29, %s921_s9  ;;  %p930_p5 = scmp.lt.u32.totalorder %s921_s9, %s1195_s6 }
  0x48   : > { %p924_p12 = pnand %p923_p8, %p922_p10 }
  0x49   : > { %p929_p4 = por %p928_p2, %p927_p1 }
  0x4a   : > { %p925_p13 = pneg %p924_p12 }
  0x4b   : > { %p931_p6 = por %p930_p5, %p929_p4 }
  0x4d   : > { %p932_p9 = pnand %p931_p6, %p925_p13 }
  0x4f   : > { %935 = shalt.err (!%p932_p9)
}
  0x50   : > { %s936_s13 = scalar_lea.vmem %s1200_s7, 1024  ;;  %s1045_s14 = smov [#allocation9]  }
  0x51   : > { %p937_p11 = scmp.ne.s32.totalorder %s1200_s7, %s936_s13  ;;  %s941_s5 = sshll.u32 %s1045_s14, 4  ;;  %s942_s5 = int_to_ptr.vmem [resolvable:$false] %s941_s5 }
  0x52   : > { %s943_s15 = scalar_lea.vmem %s942_s5, 2048  ;;  %p944_p10 = scmp.lt.s32.totalorder %s1200_s7, %s942_s5 }
  0x53   : > { %p939_p0 = pnand %p937_p11, %p923_p8  ;;  %p945_p12 = scmp.lt.s32.totalorder %s943_s15, %s936_s13 }
  0x55   : > { %p940_p3 = pneg %p939_p0  ;;  %p946_p1 = por %p945_p12, %p944_p10 }
  0x57   : > { %p947_p2 = pnand %p946_p1, %p940_p3 }
  0x59   : > { %950 = shalt.err (!%p947_p2)
}
  0x5a   : > { %781 = dma.hbm_to_vmem [thread:$0]  (!%p1328_p7), %s1195_s6, 1024, %s1200_s7, %s1202_s8, %s1042_s10, %s1042_s10, %s1043_s11  }
  0x5b   : > { %p1329_p8 = scmp.ne.s32.totalorder %s1325_s23, 0 }
  0x5c   : > { %p1330_p13 = scmp.eq.s32.totalorder (!%p1329_p8), %s1103_s21, 0 }
  0x5d   : > { %224 = sbr.rel (%p1329_p8) target bundleno = 662 (0x296), region = 36 }
  0x64   : > { %1002 = dma.done.wait (%p1330_p13), [#allocation5], 256   ;;  %p1331_p4 = pmov %p1330_p13 }
  0x66   : > { %1004 = vsyncadd (%p1331_p4), [#allocation5], 4294967040  ;;  %p1332_p5 = pmov %p1331_p4 }
  0x67   : > { %p1333_p6 = pmov %p1331_p4 }
  0x68   : > { %1006 = dma.done.wait (%p1332_p5), [#allocation8], 256  }
  0x69   : > { %1008 = vsyncadd (%p1333_p6), [#allocation8], 4294967040  ;;  %s234_s27 = sand.u32 1, %s1103_s21   ;;  %s236_s10 = sand.u32 1, %s1023_s16  }
  0x6a   : > { %s683_s11 = sshll.u32 %s236_s10, 6  ;;  %s235_s23 = scalar_lea.sflag [#allocation5], %s234_s27 }
  0x6b   : > { %s1245_s6 = scalar_lea.vmem [#allocation9], %s683_s11  ;;  %p1334_p7 = scmp.ne.s32.totalorder %s1324_s22, 0 }
  0x6d   : > { %1010 = dma.done.wait (%p1334_p7), %s235_s23, 1024  }
  0x6e   : > { %1012 = vsyncadd (%p1334_p7), %s235_s23, 4294966272  ;;  %p261_p9 = scmp.lt.s32.totalorder %s1031_s18, 2  ;;  %p265_p11 = scmp.eq.s32.totalorder %s1031_s18, 0 }
  0x6f   : > { %v845_v0 = vld [vmem:[#allocation4] sm:$0xff] (%p265_p11)   ;;  %v846_v1 = vld [vmem:[#allocation4 + $0x8] sm:$0xff] (%p265_p11)  }
  0x70   : > { %s262_s7 = scalar_select %p261_p9, %s1031_s18, 2 }
  0x71   : > { %270 = sbr.rel (!%p265_p11) target bundleno = 120 (0x78), region = 52  ;;  %287 = vst [vmem:[#allocation2] sm:$0xff] (%p265_p11), %v845_v0  ;;  %288 = vst [vmem:[#allocation2 + $0x8] sm:$0xff] (%p265_p11), %v846_v1 }
  0x72   : > { %s1259_s26 = scalar_lea.vmem %s1318_s3, %s262_s7 }
  0x78 PF: > { %v847_v2 = vld [vmem:[%s1245_s6] sm:$0xff]   ;;  %v848_v3 = vld [vmem:[%s1245_s6 + $0x8] sm:$0xff]   ;;  %v849_v4 = vld [vmem:[%s1245_s6 + $0x10] sm:$0xff]   ;;  %vm436_vm0 = vcmask 261120  }
  0x79   : > { %729 = vmatprep.subr.bf16.mxu0 %v847_v2  ;;  %v850_v5 = vld [vmem:[%s1245_s6 + $0x18] sm:$0xff]   ;;  %v301_v6 = vld [vmem:[#allocation2] sm:$0xff]  ;;  %v851_v7 = vld [vmem:[%s1245_s6 + $0x20] sm:$0xff]  }
  0x7a   : > { %730 = vmatpush3.bf16.msra.mxu0 %v847_v2  ;;  %745 = vmatprep.mubr.bf16.mxu0 %v301_v6  ;;  %v852_v8 = vld [vmem:[%s1245_s6 + $0x28] sm:$0xff]   ;;  %v853_v9 = vld [vmem:[%s1245_s6 + $0x30] sm:$0xff]   ;;  %v854_v10 = vld [vmem:[%s1245_s6 + $0x38] sm:$0xff]  }
  0x7b   : > { %731 = vmatprep.subr.bf16.mxu0 %v848_v3  ;;  %v302_v11 = vld [vmem:[#allocation2 + $0x8] sm:$0xff]  ;;  %v855_v12 = vld [vmem:[#allocation7] sm:$0xff]  }
  0x7c   : > { %753 = vmatprep.mubr.msk.bf16.mxu1 %vm436_vm0, %v855_v12  ;;  %v856_v19 = vld [vmem:[#allocation7 + $0x8] sm:$0xff]   ;;  %v700_v26 = vld [vmem:[%s1259_s26] ss:$0 sm:$0xff] (%p261_p9) }
  0x7e   : > { %732 = vmatpush3.bf16.msra.mxu0 %v848_v3 }
  0x7f   : > { %733 = vmatprep.subr.bf16.mxu0 %v849_v4 }
  0x82   : > { %734 = vmatpush3.bf16.msra.mxu0 %v849_v4 }
  0x83   : > { %735 = vmatprep.subr.bf16.mxu0 %v850_v5 }
  0x86   : > { %736 = vmatpush3.bf16.msra.mxu0 %v850_v5 }
  0x87   : > { %737 = vmatprep.subr.bf16.mxu0 %v851_v7 }
  0x8a   : > { %738 = vmatpush3.bf16.msra.mxu0 %v851_v7 }
  0x8b   : > { %739 = vmatprep.subr.bf16.mxu0 %v852_v8 }
  0x8e   : > { %740 = vmatpush3.bf16.msra.mxu0 %v852_v8 }
  0x8f   : > { %741 = vmatprep.subr.bf16.mxu0 %v853_v9 }
  0x92   : > { %742 = vmatpush3.bf16.msra.mxu0 %v853_v9 }
  0x93   : > { %743 = vmatprep.subr.bf16.mxu0 %v854_v10 }
  0x96   : > { %744 = vmatpush3.bf16.msra.mxu0 %v854_v10 }
  0x99   : > { %746 = vmatmul.mubr.bf16.vlgmr.msra.gmra.mrb[0].mxu0 %v302_v11 }
 0x16c   : > { %v747_v13 = vpop.f32.mrb[0].mxu0 }
 0x16d   : > { %v401_v14 = vpop.f32.mrb[1].mxu0 }
 0x16e   : > { %v748_v15 = vpop.f32.mrb[2].mxu0 }
 0x16f   : > { %v425_v16 = vpack.c.bf16 %v748_v15, %v747_v13  ;;  %v404_v17 = vpop.f32.mrb[3].mxu0 }
 0x170   : > { %v424_v18 = vpack.c.bf16 %v404_v17, %v401_v14 }
 0x172   : > { %749 = vmatprep.subr.bf16.mxu1 %v424_v18 }
 0x173   : > { %750 = vmatpush3.bf16.msra.mxu1 %v424_v18 }
 0x174   : > { %751 = vmatprep.subr.bf16.mxu1 %v425_v16 }
 0x177   : > { %752 = vmatpush3.bf16.msra.mxu1 %v425_v16 }
 0x17a   : > { %754 = vmatmul.mubr.msk.bf16.vlgmr.msra.gmra.mrb[0].mxu1 %vm436_vm0, %v856_v19 }
 0x24b   : > { %504 = sbr.rel (!%p261_p9) target bundleno = 626 (0x272), region = 60 }
 0x24d   : > { %v755_v20 = vpop.f32.mrb[0].mxu1 }
 0x24e   : > { %v477_v21 = vpop.f32.mrb[1].mxu1  ;;  %498 = vst [vmem:[#allocation3 + $0x10] sm:$0xff] %v755_v20 }
 0x24f   : > { %v756_v22 = vpop.f32.mrb[2].mxu1  ;;  %496 = vst [vmem:[#allocation3] sm:$0xff] %v477_v21 }
 0x250   : > { %v480_v23 = vpop.f32.mrb[3].mxu1  ;;  %499 = vst [vmem:[#allocation3 + $0x18] sm:$0xff] %v756_v22 }
 0x251   : > { %497 = vst [vmem:[#allocation3 + $0x8] sm:$0xff] %v480_v23 }
 0x255   : > { %v507_v29 = vld [vmem:[#allocation3 + $0x10] sm:$0xff] }
 0x256   : > { %v505_v24 = vld [vmem:[#allocation3] sm:$0xff]  ;;  %v518_v31 = vadd.f32 %v700_v26, %v507_v29 }
 0x257   : > { %v516_v27 = vadd.f32 %v700_v26, %v505_v24  ;;  %v508_v30 = vld [vmem:[#allocation3 + $0x18] sm:$0xff] }
 0x258   : > { %v506_v25 = vld [vmem:[#allocation3 + $0x8] sm:$0xff]  ;;  %v519_v32 = vadd.f32 %v700_v26, %v508_v30  ;;  %v526_v35 = vmin.f32 %v518_v31, 0.0  ;;  %vm522_vm3 = vcmp.gt.f32.partialorder %v518_v31, 0.0 }
 0x259   : > { %v517_v28 = vadd.f32 %v700_v26, %v506_v25  ;;  %v524_v33 = vmin.f32 %v516_v27, 0.0  ;;  %vm520_vm1 = vcmp.gt.f32.partialorder %v516_v27, 0.0 }
 0x25a   : > { %v527_v36 = vmin.f32 %v519_v32, 0.0  ;;  %v532_v39 = vmul.f32 1.442695, %v526_v35  ;;  %vm523_vm4 = vcmp.gt.f32.partialorder %v519_v32, 0.0 }
 0x25b   : > { %v525_v34 = vmin.f32 %v517_v28, 0.0  ;;  %v528_v37 = vmul.f32 1.442695, %v524_v33  ;;  %vm521_vm2 = vcmp.gt.f32.partialorder %v517_v28, 0.0 }
 0x25c   : > { %v534_v40 = vmul.f32 1.442695, %v527_v36 }
 0x25d   : > { %v530_v38 = vmul.f32 1.442695, %v525_v34  ;;  %857 = vpow2.f32 %v528_v37 }
 0x25f   : > { %859 = vpow2.f32 %v530_v38 }
 0x260   : > { %861 = vpow2.f32 %v532_v39 }
 0x261   : > { %863 = vpow2.f32 %v534_v40 }
 0x267   : > { %v858_v41 = vpop.eup %857 }
 0x268   : > { %v701_v43 = vadd.f32 -1.0, %v858_v41 }
 0x269   : > { %v860_v42 = vpop.eup %859 }
 0x26a   : > { %v862_v44 = vpop.eup %861  ;;  %v702_v45 = vadd.f32 -1.0, %v860_v42  ;;  %v540_v47 = vsel %vm520_vm1, %v516_v27, %v701_v43 }
 0x26b   : > { %v864_v46 = vpop.eup %863  ;;  %v703_v48 = vadd.f32 -1.0, %v862_v44 }
 0x26c   : > { %v541_v49 = vsel %vm521_vm2, %v517_v28, %v702_v45  ;;  %v704_v50 = vadd.f32 -1.0, %v864_v46 }
 0x26d   : > { %v544_v51 = vpack.c.bf16 %v541_v49, %v540_v47  ;;  %v542_v52 = vsel %vm522_vm3, %v518_v31, %v703_v48 }
 0x26e   : > { %v543_v53 = vsel %vm523_vm4, %v519_v32, %v704_v50 }
 0x26f   : > { %546 = vst [vmem:[#allocation2] sm:$0xff] %v544_v51  ;;  %v545_v54 = vpack.c.bf16 %v543_v53, %v542_v52 }
 0x271   : > { %547 = vst [vmem:[#allocation2 + $0x8] sm:$0xff] %v545_v54 }
 0x272 PF: > { %p548_p0 = scmp.eq.s32.totalorder %s1031_s18, 2 }
 0x273   : > { %v706_v56 = vld [vmem:[%s1259_s26] ss:$0 sm:$0xff] (%p548_p0) }
 0x274   : > { %552 = sbr.rel (!%p548_p0) target bundleno = 636 (0x27c), region = 64 }
 0x275   : > { %v555_v60 = vld [vmem:[#allocation3 + $0x10] sm:$0xff] (%p548_p0) }
 0x276   : > { %v553_v55 = vld [vmem:[#allocation3] sm:$0xff] (%p548_p0)  ;;  %v566_v62 = vadd.f32 (%p548_p0), %v706_v56, %v555_v60 }
 0x277   : > { %v564_v58 = vadd.f32 (%p548_p0), %v706_v56, %v553_v55  ;;  %v556_v61 = vld [vmem:[#allocation3 + $0x18] sm:$0xff] (%p548_p0) }
 0x278   : > { %v554_v57 = vld [vmem:[#allocation3 + $0x8] sm:$0xff] (%p548_p0)  ;;  %v567_v63 = vadd.f32 (%p548_p0), %v706_v56, %v556_v61  ;;  %570 = vst [vmem:[#allocation10 + $0x10] sm:$0xff] (%p548_p0), %v566_v62 }
 0x279   : > { %v565_v59 = vadd.f32 (%p548_p0), %v706_v56, %v554_v57  ;;  %568 = vst [vmem:[#allocation10] sm:$0xff] (%p548_p0), %v564_v58 }
 0x27a   : > { %571 = vst [vmem:[#allocation10 + $0x18] sm:$0xff] (%p548_p0), %v567_v63 }
 0x27b   : > { %569 = vst [vmem:[#allocation10 + $0x8] sm:$0xff] %v565_v59 }
 0x27c PF: > { %p787_p3 = scmp.eq.s32.totalorder %s1103_s21, 2  ;;  %s1046_s18 = smov [#allocation10]  }
 0x27d   : > { %s578_s22 = sshll.u32 %s1046_s18, 4  ;;  %s579_s22 = int_to_ptr.vmem [resolvable:$true] %s578_s22 }
 0x27e   : > { %s951_s28 = scalar_lea.vmem %s579_s22, 512  ;;  %p958_p2 = scmp.lt.s32.totalorder %s579_s22, %s579_s22 }
 0x27f   : > { %p952_p10 = scmp.ne.s32.totalorder %s579_s22, %s951_s28  ;;  %p959_p8 = scmp.lt.s32.totalorder %s951_s28, %s951_s28 }
 0x281   : > { %p953_p12 = pnand %p952_p10, %p787_p3  ;;  %p960_p13 = por %p959_p8, %p958_p2 }
 0x283   : > { %p954_p1 = pneg %p953_p12 }
 0x285   : > { %p961_p4 = pnand %p960_p13, %p954_p1 }
 0x287   : > { %964 = shalt.err (!%p961_p4)
}
 0x288   : > { %s965_s30 = scalar_lea.hbm %s1319_s4, 512 }
 0x289   : > { %p966_p5 = scmp.ne.s32.totalorder %s1319_s4, %s965_s30  ;;  %p971_p9 = scmp.lt.u32.totalorder %s965_s30, %s1319_s4 }
 0x28b   : > { %p967_p6 = pnand %p966_p5, %p787_p3 }
 0x28d   : > { %p968_p7 = pneg %p967_p6 }
 0x28f   : > { %p973_p11 = pnand %p971_p9, %p968_p7 }
 0x291   : > { %976 = shalt.err (!%p973_p11)
}
 0x292   : > { %s1047_s27 = smov 128   ;;  %s1048_s10 = smov 8  }
 0x293   : > { %768 = dma.vmem_to_hbm [thread:$0]  (%p787_p3), %s579_s22, 512, %s1319_s4, [#allocation6], %s1047_s27, %s1047_s27, %s1048_s10  }
 0x294   : > { %1014 = dma.done.wait (%p787_p3), [#allocation6], 512  }
 0x295   : > { %1016 = vsyncadd (%p787_p3), [#allocation6], 4294966784 }
 0x296 PF: > { %s17_s20 = sadd.s32 1, %s1039_s20   ;;  %s1335_s15 = smov %s1023_s16 }
 0x297   : > { %p14_p0 = scmp.ge.s32.totalorder %s17_s20, 5   ;;  %s1336_s16 = smov %s1027_s17 }
 0x298   : > { %s1337_s17 = smov %s1198_s25  ;;  %s1338_s18 = smov %s1035_s19 }
 0x299   : > { %s1339_s19 = smov %s1341_s12  ;;  %16 = sbr.rel (!%p14_p0) target bundleno = 5 (0x5), region = 101 }
 0x2a0   :  { %594 = vsyncpa [#allocation5], 1 }
 0x2a1   :  { %596 = vsyncpa [#allocation5 + $0x1], 1 }
 0x2a2   :  { %597 = vsyncpa [#allocation8], 1 }
 0x2a3   :  { %598 = vsyncpa [#allocation6], 1 }
 0x2a4   :  { %600 = vsyncpa [#allocation6 + $0x1], 1 }

</bundles_post_ra>
